<compile_context>
chip_gen: v6e
topology: v6e:2x2x1
jax: 0.10.0
libtpu: 0.0.40
codegen_flags: <defaults>
</compile_context>

<pallas_src>
import jax
import jax.numpy as jnp
from jax.experimental import pallas as pl
from jax.experimental.pallas import tpu as pltpu


# ----------------------------------------------------------------------------
# Pass 1: 3x3 conv as three banded MXU matmuls + per-batch partial BN stats
# ----------------------------------------------------------------------------
def _conv_stats_kernel(x_ref, w_ref, y_ref, s1_ref, s2_ref):
    """One batch element per grid step.

    x_ref:  (1, H+2, (W+2)*Cin)    bf16  padded image (pre-cast in wrapper)
    w_ref:  (3, (W+2)*Cin, W*Cout) bf16  banded per-ky weight matrices
    y_ref:  (H, W*Cout)            bf16  conv output rows (lane-dense)
    s1_ref: (1, 1, W*Cout)         f32   per-lane sums
    s2_ref: (1, 1, W*Cout)         f32   per-lane sums of squares
    """
    h_out = y_ref.shape[0]

    # Load the padded slab once; the three ky matmuls read overlapping static
    # slices (no per-ky reload, no per-ky cast).
    xb = x_ref[0]                                    # (H+2, (W+2)*Cin) bf16

    acc = jnp.dot(xb[0:h_out], w_ref[0], preferred_element_type=jnp.float32)
    acc = acc + jnp.dot(xb[1:h_out + 1], w_ref[1],
                        preferred_element_type=jnp.float32)
    acc = acc + jnp.dot(xb[2:h_out + 2], w_ref[2],
                        preferred_element_type=jnp.float32)

    # bf16 intermediate halves the HBM write here and the read in pass 2.
    y_ref[...] = acc.astype(y_ref.dtype)

    # BN partials from the f32 accumulator; two direct full-block stores.
    s1_ref[0] = jnp.sum(acc, axis=0, keepdims=True)
    s2_ref[0] = jnp.sum(acc * acc, axis=0, keepdims=True)


# ----------------------------------------------------------------------------
# Pass 2: fused BN affine (precomputed scale/shift) + ReLU, lane-dense
# ----------------------------------------------------------------------------
def _bn_relu_kernel(y_ref, scale_ref, shift_ref, o_ref):
    y = y_ref[...].astype(jnp.float32)
    o_ref[...] = jnp.maximum(y * scale_ref[...] + shift_ref[...], 0.0)


# ----------------------------------------------------------------------------
# Weight preparation (hoisted out of the jitted forward; reuse across calls)
# ----------------------------------------------------------------------------
def prepare_conv_weights(w_oihw, width):
    """(Cout, Cin, 3, 3) -> (3, (W+2)*Cin, W*Cout) bf16 block-Toeplitz bands.

    band[ky, (w+kx)*Cin + ci, w*Cout + co] = weight[co, ci, ky, kx], so a
    matmul of a padded input row slab against band[ky], summed over ky, is
    exactly the 3x3 cross-correlation with padding=1, produced directly in the
    lane-dense (W, Cout) output layout.
    """
    c_out, c_in, _, _ = w_oihw.shape
    wp = width + 2
    w_hwio = jnp.transpose(w_oihw, (2, 3, 1, 0)).astype(jnp.float32)  # ky,kx,ci,co
    band = jnp.zeros((3, wp, c_in, width, c_out), jnp.float32)
    for kx in range(3):  # 3 broadcast-adds, not 9 krons; runs eagerly, once
        shift = jnp.eye(wp, width, k=-kx, dtype=jnp.float32)          # (Wp, W)
        band = band + (shift[None, :, None, :, None]
                       * w_hwio[:, kx][:, None, :, None, :])
    return band.reshape(3, wp * c_in, width * c_out).astype(jnp.bfloat16)


# ----------------------------------------------------------------------------
# Forward (jitted); w_band comes from prepare_conv_weights
# ----------------------------------------------------------------------------
@jax.jit
def conv_block_dense(x_nchw, w_band, gamma, beta):
    """NCHW in / NCHW out, matching the PyTorch ConvBlockDense forward."""
    eps = 1e-5
    n, c_in, h, w = x_nchw.shape
    c_out = gamma.shape[0]
    hp = h + 2
    wc_in = (w + 2) * c_in
    wc_out = w * c_out
    assert w_band.shape == (3, wc_in, wc_out)
    # Per-step output block is (h, wc_out) out of (n*h, wc_out): need h % 8 == 0
    # (or n == 1) to satisfy the (8, 128) sublane constraint.
    assert h % 8 == 0 or n == 1

    # Single layout pass in: NCHW -> NHWC, pad=1, fold (W, Cin) into lanes,
    # pre-cast to bf16 (halves the input DMA; removes in-kernel casts).
    x_pad = jnp.pad(jnp.transpose(x_nchw, (0, 2, 3, 1)),
                    ((0, 0), (1, 1), (1, 1), (0, 0)))
    x_pad = x_pad.reshape(n, hp, wc_in).astype(jnp.bfloat16)

    cparams = pltpu.CompilerParams(
        dimension_semantics=("parallel",),
        vmem_limit_bytes=32 * 1024 * 1024)

    # ---- Pass 1: conv + partial stats; one batch element (all H rows) / step ----
    y_conv, s1, s2 = pl.pallas_call(
        _conv_stats_kernel,
        grid=(n,),
        in_specs=[
            pl.BlockSpec((1, hp, wc_in), lambda b: (b, 0, 0)),
            pl.BlockSpec((3, wc_in, wc_out), lambda b: (0, 0, 0)),
        ],
        out_specs=[
            pl.BlockSpec((h, wc_out), lambda b: (b, 0)),
            pl.BlockSpec((1, 1, wc_out), lambda b: (b, 0, 0)),
            pl.BlockSpec((1, 1, wc_out), lambda b: (b, 0, 0)),
        ],
        out_shape=[
            jax.ShapeDtypeStruct((n * h, wc_out), jnp.bfloat16),
            jax.ShapeDtypeStruct((n, 1, wc_out), jnp.float32),
            jax.ShapeDtypeStruct((n, 1, wc_out), jnp.float32),
        ],
        compiler_params=cparams,
    )(x_pad, w_band)

    # ---- Tiny cross-batch reduction + BN coefficient math (XLA, a few KB) ----
    count = n * h * w
    sum1 = jnp.sum(s1[:, 0, :], axis=0).reshape(w, c_out).sum(axis=0)  # (Cout,)
    sum2 = jnp.sum(s2[:, 0, :], axis=0).reshape(w, c_out).sum(axis=0)  # (Cout,)
    mean = sum1 / count
    # Biased variance, as BatchNorm uses for normalization.
    # TODO(synk): use a shifted sum-of-squares for very large counts.
    var = jnp.maximum(sum2 / count - mean * mean, 0.0)
    inv_std = jax.lax.rsqrt(var + eps)
    scale = gamma.astype(jnp.float32) * inv_std                 # (Cout,)
    shift = beta.astype(jnp.float32) - mean * scale             # (Cout,)
    scale_t = jnp.tile(scale, w).reshape(1, wc_out)             # lane-aligned
    shift_t = jnp.tile(shift, w).reshape(1, wc_out)

    # ---- Pass 2: scale/shift + ReLU over the whole lane-dense slab ----
    rows = n * h
    tr = rows if rows <= 1024 else (512 if rows % 512 == 0 else rows)
    out_flat = pl.pallas_call(
        _bn_relu_kernel,
        grid=(rows // tr,),
        in_specs=[
            pl.BlockSpec((tr, wc_out), lambda i: (i, 0)),
            pl.BlockSpec((1, wc_out), lambda i: (0, 0)),
            pl.BlockSpec((1, wc_out), lambda i: (0, 0)),
        ],
        out_specs=pl.BlockSpec((tr, wc_out), lambda i: (i, 0)),
        out_shape=jax.ShapeDtypeStruct((rows, wc_out), jnp.float32),
        compiler_params=pltpu.CompilerParams(
            dimension_semantics=("parallel",),
            vmem_limit_bytes=32 * 1024 * 1024),
    )(y_conv, scale_t, shift_t)

    # Single layout pass out: (N*H, W*Cout) -> NCHW.
    return jnp.transpose(out_flat.reshape(n, h, w, c_out), (0, 3, 1, 2))


def reference_forward(x_nchw, w_oihw, gamma, beta, eps=1e-5):
    """Pure-JAX f32 reference of the PyTorch forward (training-mode BN)."""
    y = jax.lax.conv_general_dilated(
        x_nchw, w_oihw, window_strides=(1, 1), padding=((1, 1), (1, 1)),
        dimension_numbers=("NCHW", "OIHW", "NCHW"))
    mean = y.mean(axis=(0, 2, 3), keepdims=True)
    var = y.var(axis=(0, 2, 3), keepdims=True)          # biased, as BN uses
    yhat = (y - mean) * jax.lax.rsqrt(var + eps)
    out = yhat * gamma.reshape(1, -1, 1, 1) + beta.reshape(1, -1, 1, 1)
    return jnp.maximum(out, 0.0)


if __name__ == "__main__":
    N, Cin, H, W = 2, 4, 16, 16
    Cout = 8

    key = jax.random.PRNGKey(0)
    kx_, kw_ = jax.random.split(key)

    x = jax.random.normal(kx_, (N, Cin, H, W), dtype=jnp.float32)

    # Deterministic parameter init (nn.Conv2d shape, bias=False; BN gamma/beta).
    fan_in = Cin * 3 * 3
    bound = 1.0 / (fan_in ** 0.5)
    w = jax.random.uniform(kw_, (Cout, Cin, 3, 3), jnp.float32, -bound, bound)
    gamma = jnp.ones((Cout,), jnp.float32)
    beta = jnp.zeros((Cout,), jnp.float32)

    w_band = prepare_conv_weights(w, W)      # hoisted: built once, reusable
    out = jax.block_until_ready(conv_block_dense(x, w_band, gamma, beta))
    ref = reference_forward(x, w, gamma, beta)

    assert out.shape == (N, Cout, H, W)
    # bf16 matmul operands + bf16 intermediate, f32 accumulation and BN stats.
    assert jnp.allclose(out, ref, atol=3e-2, rtol=3e-2), "mismatch vs reference"

    print("KERNEL_OK")
</pallas_src>

<mosaic_0001>
module attributes {stable_mosaic.version = 11 : i64} {
  func.func @_bn_relu_kernel(%arg0: i32, %arg1: memref<32x128xbf16, #tpu.memory_space<vmem>>, %arg2: memref<1x128xf32, #tpu.memory_space<vmem>>, %arg3: memref<1x128xf32, #tpu.memory_space<vmem>>, %arg4: memref<32x128xf32, #tpu.memory_space<vmem>>) attributes {dimension_semantics = [#tpu.dimension_semantics<parallel>], iteration_bounds = array<i64: 1>, scalar_prefetch = 0 : i64, scratch_operands = 0 : i64, tpu.core_type = #tpu.core_type<tc>, window_params = [{transform_indices = @transform_0, window_bounds = array<i64: 32, 128>}, {pipeline_mode = #tpu.pipeline_mode<synchronous>, transform_indices = @transform_1, window_bounds = array<i64: 1, 128>}, {pipeline_mode = #tpu.pipeline_mode<synchronous>, transform_indices = @transform_2, window_bounds = array<i64: 1, 128>}, {transform_indices = @transform_3, window_bounds = array<i64: 32, 128>}]} {
    %c0 = arith.constant 0 : index
    %c0_0 = arith.constant 0 : index
    %0 = vector.load %arg1[%c0, %c0_0] : memref<32x128xbf16, #tpu.memory_space<vmem>>, vector<32x128xbf16>
    %1 = arith.extf %0 : vector<32x128xbf16> to vector<32x128xf32>
    %c0_1 = arith.constant 0 : index
    %c0_2 = arith.constant 0 : index
    %2 = vector.load %arg2[%c0_1, %c0_2] : memref<1x128xf32, #tpu.memory_space<vmem>>, vector<1x128xf32>
    %3 = vector.broadcast %2 : vector<1x128xf32> to vector<32x128xf32>
    %4 = arith.mulf %1, %3 : vector<32x128xf32>
    %c0_3 = arith.constant 0 : index
    %c0_4 = arith.constant 0 : index
    %5 = vector.load %arg3[%c0_3, %c0_4] : memref<1x128xf32, #tpu.memory_space<vmem>>, vector<1x128xf32>
    %6 = vector.broadcast %5 : vector<1x128xf32> to vector<32x128xf32>
    %7 = arith.addf %4, %6 : vector<32x128xf32>
    %cst = arith.constant 0.000000e+00 : f32
    %8 = vector.broadcast %cst : f32 to vector<32x128xf32>
    %9 = arith.maximumf %7, %8 : vector<32x128xf32>
    %c0_5 = arith.constant 0 : index
    %c0_6 = arith.constant 0 : index
    %10 = vector.load %arg4[%c0_5, %c0_6] : memref<32x128xf32, #tpu.memory_space<vmem>>, vector<32x128xf32>
    tpu.vector_store %arg4[%c0_5, %c0_6], %9 {strides = array<i32>} : memref<32x128xf32, #tpu.memory_space<vmem>>, vector<32x128xf32>,
    return
  }
  func.func @transform_0(%arg0: i32) -> (i32, i32) {
    %c0_i32 = arith.constant 0 : i32
    %c0_i32_0 = arith.constant 0 : i32
    return %arg0, %c0_i32 : i32, i32
  }
  func.func @transform_1(%arg0: i32) -> (i32, i32) {
    %c0_i32 = arith.constant 0 : i32
    %c0_i32_0 = arith.constant 0 : i32
    %c0_i32_1 = arith.constant 0 : i32
    return %c0_i32, %c0_i32_0 : i32, i32
  }
  func.func @transform_2(%arg0: i32) -> (i32, i32) {
    %c0_i32 = arith.constant 0 : i32
    %c0_i32_0 = arith.constant 0 : i32
    %c0_i32_1 = arith.constant 0 : i32
    return %c0_i32, %c0_i32_0 : i32, i32
  }
  func.func @transform_3(%arg0: i32) -> (i32, i32) {
    %c0_i32 = arith.constant 0 : i32
    %c0_i32_0 = arith.constant 0 : i32
    return %arg0, %c0_i32 : i32, i32
  }
}

module attributes {stable_mosaic.version = 11 : i64} {
  func.func @_conv_stats_kernel(%arg0: i32, %arg1: memref<1x18x72xbf16, #tpu.memory_space<vmem>>, %arg2: memref<3x72x128xbf16, #tpu.memory_space<vmem>>, %arg3: memref<16x128xbf16, #tpu.memory_space<vmem>>, %arg4: memref<1x1x128xf32, #tpu.memory_space<vmem>>, %arg5: memref<1x1x128xf32, #tpu.memory_space<vmem>>) attributes {dimension_semantics = [#tpu.dimension_semantics<parallel>], iteration_bounds = array<i64: 2>, scalar_prefetch = 0 : i64, scratch_operands = 0 : i64, tpu.core_type = #tpu.core_type<tc>, window_params = [{transform_indices = @transform_0, window_bounds = array<i64: 1, 18, 72>}, {pipeline_mode = #tpu.pipeline_mode<synchronous>, transform_indices = @transform_1, window_bounds = array<i64: 3, 72, 128>}, {transform_indices = @transform_2, window_bounds = array<i64: 16, 128>}, {transform_indices = @transform_3, window_bounds = array<i64: 1, 1, 128>}, {transform_indices = @transform_4, window_bounds = array<i64: 1, 1, 128>}]} {
    %c0 = arith.constant 0 : index
    %c0_0 = arith.constant 0 : index
    %c0_1 = arith.constant 0 : index
    %0 = vector.load %arg1[%c0, %c0_0, %c0_1] : memref<1x18x72xbf16, #tpu.memory_space<vmem>>, vector<1x18x72xbf16>
    %1 = vector.shape_cast %0 : vector<1x18x72xbf16> to vector<18x72xbf16>
    %2 = vector.extract_strided_slice %1 {offsets = [0, 0], sizes = [16, 72], strides = [1, 1]} : vector<18x72xbf16> to vector<16x72xbf16>
    %c0_2 = arith.constant 0 : index
    %c0_3 = arith.constant 0 : index
    %c0_4 = arith.constant 0 : index
    %3 = vector.load %arg2[%c0_2, %c0_3, %c0_4] : memref<3x72x128xbf16, #tpu.memory_space<vmem>>, vector<1x72x128xbf16>
    %4 = vector.shape_cast %3 : vector<1x72x128xbf16> to vector<72x128xbf16>
    %cst = arith.constant dense<0.000000e+00> : vector<16x128xf32>
    %5 = tpu.matmul %2, %4, %cst {dimension_numbers = #tpu.dot_dimension_numbers<[1], [0], [0], [1], [0, 0, 1, 1], [], []>} : vector<16x72xbf16>, vector<72x128xbf16>, vector<16x128xf32> -> vector<16x128xf32>
    %6 = vector.extract_strided_slice %1 {offsets = [1, 0], sizes = [16, 72], strides = [1, 1]} : vector<18x72xbf16> to vector<16x72xbf16>
    %c1 = arith.constant 1 : index
    %c0_5 = arith.constant 0 : index
    %c0_6 = arith.constant 0 : index
    %7 = vector.load %arg2[%c1, %c0_5, %c0_6] : memref<3x72x128xbf16, #tpu.memory_space<vmem>>, vector<1x72x128xbf16>
    %8 = vector.shape_cast %7 : vector<1x72x128xbf16> to vector<72x128xbf16>
    %cst_7 = arith.constant dense<0.000000e+00> : vector<16x128xf32>
    %9 = tpu.matmul %6, %8, %cst_7 {dimension_numbers = #tpu.dot_dimension_numbers<[1], [0], [0], [1], [0, 0, 1, 1], [], []>} : vector<16x72xbf16>, vector<72x128xbf16>, vector<16x128xf32> -> vector<16x128xf32>
    %10 = arith.addf %5, %9 : vector<16x128xf32>
    %11 = vector.extract_strided_slice %1 {offsets = [2, 0], sizes = [16, 72], strides = [1, 1]} : vector<18x72xbf16> to vector<16x72xbf16>
    %c2 = arith.constant 2 : index
    %c0_8 = arith.constant 0 : index
    %c0_9 = arith.constant 0 : index
    %12 = vector.load %arg2[%c2, %c0_8, %c0_9] : memref<3x72x128xbf16, #tpu.memory_space<vmem>>, vector<1x72x128xbf16>
    %13 = vector.shape_cast %12 : vector<1x72x128xbf16> to vector<72x128xbf16>
    %cst_10 = arith.constant dense<0.000000e+00> : vector<16x128xf32>
    %14 = tpu.matmul %11, %13, %cst_10 {dimension_numbers = #tpu.dot_dimension_numbers<[1], [0], [0], [1], [0, 0, 1, 1], [], []>} : vector<16x72xbf16>, vector<72x128xbf16>, vector<16x128xf32> -> vector<16x128xf32>
    %15 = arith.addf %10, %14 : vector<16x128xf32>
    %16 = arith.truncf %15 : vector<16x128xf32> to vector<16x128xbf16>
    %c0_11 = arith.constant 0 : index
    %c0_12 = arith.constant 0 : index
    %17 = vector.load %arg3[%c0_11, %c0_12] : memref<16x128xbf16, #tpu.memory_space<vmem>>, vector<16x128xbf16>
    tpu.vector_store %arg3[%c0_11, %c0_12], %16 {strides = array<i32>} : memref<16x128xbf16, #tpu.memory_space<vmem>>, vector<16x128xbf16>,
    %cst_13 = arith.constant dense<0.000000e+00> : vector<128xf32>
    %18 = vector.multi_reduction <add>, %15, %cst_13 [0] : vector<16x128xf32> to vector<128xf32>
    %19 = vector.shape_cast %18 : vector<128xf32> to vector<1x128xf32>
    %c0_14 = arith.constant 0 : index
    %c0_15 = arith.constant 0 : index
    %c0_16 = arith.constant 0 : index
    %20 = vector.load %arg4[%c0_14, %c0_15, %c0_16] : memref<1x1x128xf32, #tpu.memory_space<vmem>>, vector<1x1x128xf32>
    %21 = vector.shape_cast %20 : vector<1x1x128xf32> to vector<1x128xf32>
    %22 = vector.shape_cast %19 : vector<1x128xf32> to vector<1x1x128xf32>
    tpu.vector_store %arg4[%c0_14, %c0_15, %c0_16], %22 {strides = array<i32>} : memref<1x1x128xf32, #tpu.memory_space<vmem>>, vector<1x1x128xf32>,
    %23 = arith.mulf %15, %15 : vector<16x128xf32>
    %cst_17 = arith.constant dense<0.000000e+00> : vector<128xf32>
    %24 = vector.multi_reduction <add>, %23, %cst_17 [0] : vector<16x128xf32> to vector<128xf32>
    %25 = vector.shape_cast %24 : vector<128xf32> to vector<1x128xf32>
    %c0_18 = arith.constant 0 : index
    %c0_19 = arith.constant 0 : index
    %c0_20 = arith.constant 0 : index
    %26 = vector.load %arg5[%c0_18, %c0_19, %c0_20] : memref<1x1x128xf32, #tpu.memory_space<vmem>>, vector<1x1x128xf32>
    %27 = vector.shape_cast %26 : vector<1x1x128xf32> to vector<1x128xf32>
    %28 = vector.shape_cast %25 : vector<1x128xf32> to vector<1x1x128xf32>
    tpu.vector_store %arg5[%c0_18, %c0_19, %c0_20], %28 {strides = array<i32>} : memref<1x1x128xf32, #tpu.memory_space<vmem>>, vector<1x1x128xf32>,
    return
  }
  func.func @transform_0(%arg0: i32) -> (i32, i32, i32) {
    %c0_i32 = arith.constant 0 : i32
    %c0_i32_0 = arith.constant 0 : i32
    %c0_i32_1 = arith.constant 0 : i32
    return %arg0, %c0_i32, %c0_i32_0 : i32, i32, i32
  }
  func.func @transform_1(%arg0: i32) -> (i32, i32, i32) {
    %c0_i32 = arith.constant 0 : i32
    %c0_i32_0 = arith.constant 0 : i32
    %c0_i32_1 = arith.constant 0 : i32
    %c0_i32_2 = arith.constant 0 : i32
    return %c0_i32, %c0_i32_0, %c0_i32_1 : i32, i32, i32
  }
  func.func @transform_2(%arg0: i32) -> (i32, i32) {
    %c0_i32 = arith.constant 0 : i32
    %c0_i32_0 = arith.constant 0 : i32
    return %arg0, %c0_i32 : i32, i32
  }
  func.func @transform_3(%arg0: i32) -> (i32, i32, i32) {
    %c0_i32 = arith.constant 0 : i32
    %c0_i32_0 = arith.constant 0 : i32
    %c0_i32_1 = arith.constant 0 : i32
    return %arg0, %c0_i32, %c0_i32_0 : i32, i32, i32
  }
  func.func @transform_4(%arg0: i32) -> (i32, i32, i32) {
    %c0_i32 = arith.constant 0 : i32
    %c0_i32_0 = arith.constant 0 : i32
    %c0_i32_1 = arith.constant 0 : i32
    return %arg0, %c0_i32, %c0_i32_0 : i32, i32, i32
  }
}

</mosaic_0001>

<bundles_post_ra>
// kernel: tile.18
= control target key start
LH: loop header
LB: loop body
LE: loop exit
PB: predicated region body
PF: predicated region fallthrough
CT: control target
= control target key end

     0   :  { %s28_s0 = inlined_call_operand.vmem [shape: f32[8], index: 0, kind: input, shape index: {}]   ;;  %s29_s1 = inlined_call_operand.vmem [shape: f32[16,8], index: 1, kind: output, shape index: {}]  }
   0x1   :  { %v4_v0 = vld [vmem:[%s28_s0] ss:$0 sm:$0xff] }
   0x2   :  { %5 = vst [vmem:[%s29_s1] sm:$0xff] %v4_v0  ;;  %8 = vst [vmem:[%s29_s1 + $0x8] sm:$0xff] %v4_v0 }

// kernel: tile.19
= control target key start
LH: loop header
LB: loop body
LE: loop exit
PB: predicated region body
PF: predicated region fallthrough
CT: control target
= control target key end

     0   :  { %s133_s10 = smov 120   ;;  %s134_s11 = smov 104   ;;  %vm3_vm0 = vcmask 64512   ;;  %vm9_vm1 = vcmask 1048512   ;;  %vm15_vm2 = vcmask 982912   ;;  %vm21_vm3 = vcmask 917312   ;;  %s209_s0 = inlined_call_operand.vmem [shape: f32[16,8], index: 0, kind: input, shape index: {}]   ;;  %s210_s1 = inlined_call_operand.vmem [shape: f32[1,128], index: 1, kind: output, shape index: {}]  }
   0x1   :  { %v103_v0 = vld [vmem:[%s209_s0 + $0xf] sm:$0x1]   ;;  %v105_v1 = vld [vmem:[%s209_s0 + $0xd] sm:$0x1]   ;;  %v104_v2 = vld [vmem:[%s209_s0 + $0xe] sm:$0x1]  }
   0x2   :  { %7 = vrot.lane.b32.xlu0 %v103_v0, %s133_s10  ;;  %19 = vrot.lane.b32.xlu1 %v105_v1, %s134_s11  ;;  %v106_v3 = vld [vmem:[%s209_s0 + $0xc] sm:$0x1]   ;;  %s135_s16 = smov 112   ;;  %s136_s17 = smov 96   ;;  %v107_v4 = vld [vmem:[%s209_s0 + $0xb] sm:$0x1]  }
   0x3   :  { %v108_v5 = vld [vmem:[%s209_s0 + $0xa] sm:$0x1]   ;;  %v2_v6 = vld [vmem:[%s209_s0] sm:$0x1]   ;;  %s137_s24 = smov 88   ;;  %s138_s25 = smov 80  }
   0x4   :  { %4 = vst.msk [vmem:[#allocation0] sm:$0x1] %vm3_vm0, %v2_v6   ;;  %v109_v7 = vld [vmem:[%s209_s0 + $0x9] sm:$0x1]   ;;  %v110_v8 = vld [vmem:[%s209_s0 + $0x8] sm:$0x1]  }
   0x5   :  { %s139_s30 = smov 72   ;;  %s140_s2 = smov 64   ;;  %v111_v9 = vld [vmem:[%s209_s0 + $0x7] sm:$0x1]   ;;  %v112_v10 = vld [vmem:[%s209_s0 + $0x6] sm:$0x1]  }
   0x6   :  { %13 = vrot.lane.b32.xlu0 %v104_v2, %s135_s16  ;;  %25 = vrot.lane.b32.xlu1 %v106_v3, %s136_s17  ;;  %s141_s7 = smov 56   ;;  %s142_s8 = smov 48   ;;  %v113_v11 = vld [vmem:[%s209_s0 + $0x5] sm:$0x1]   ;;  %v114_v12 = vld [vmem:[%s209_s0 + $0x4] sm:$0x1]  }
   0x7   :  { %s143_s13 = smov 40   ;;  %s144_s14 = smov 32   ;;  %v115_v13 = vld [vmem:[%s209_s0 + $0x3] sm:$0x1]   ;;  %v116_v14 = vld [vmem:[%s209_s0 + $0x2] sm:$0x1]  }
   0x8   :  { %s145_s19 = smov 24   ;;  %s146_s20 = smov 16   ;;  %v117_v15 = vld [vmem:[%s209_s0 + $0x1] sm:$0x1]   ;;  %vm27_vm4 = vcmask 851712   ;;  %vm33_vm5 = vcmask 786112  }
   0x9   :  { %s147_s0 = smov 8   ;;  %vm39_vm6 = vcmask 720512   ;;  %vm45_vm7 = vcmask 654912   ;;  %vm51_vm8 = vcmask 589312   ;;  %vm57_vm9 = vcmask 523712  }
   0xa   :  { %31 = vrot.lane.b32.xlu0 %v107_v4, %s137_s24  ;;  %37 = vrot.lane.b32.xlu1 %v108_v5, %s138_s25  ;;  %vm63_vm10 = vcmask 458112   ;;  %vm69_vm11 = vcmask 392512   ;;  %vm75_vm12 = vcmask 326912   ;;  %vm81_vm13 = vcmask 261312  }
   0xb   :  { %vm87_vm14 = vcmask 195712   ;;  %vm93_vm15 = vcmask 130112  }
   0xe   :  { %43 = vrot.lane.b32.xlu0 %v109_v7, %s139_s30  ;;  %49 = vrot.lane.b32.xlu1 %v110_v8, %s140_s2 }
  0x12   :  { %55 = vrot.lane.b32.xlu0 %v111_v9, %s141_s7  ;;  %61 = vrot.lane.b32.xlu1 %v112_v10, %s142_s8 }
  0x16   :  { %67 = vrot.lane.b32.xlu0 %v113_v11, %s143_s13  ;;  %73 = vrot.lane.b32.xlu1 %v114_v12, %s144_s14 }
  0x1a   :  { %79 = vrot.lane.b32.xlu0 %v115_v13, %s145_s19  ;;  %85 = vrot.lane.b32.xlu1 %v116_v14, %s146_s20 }
  0x1e   :  { %91 = vrot.lane.b32.xlu0 %v117_v15, %s147_s0 }
  0x74   :  { %v8_v16 = vpop.permute.xlu0 %7   ;;  %v20_v17 = vpop.permute.xlu1 %19  }
  0x75   :  { %10 = vst.msk [vmem:[#allocation0] sm:$0x1] %vm9_vm1, %v8_v16  }
  0x78   :  { %v14_v18 = vpop.permute.xlu0 %13   ;;  %v26_v19 = vpop.permute.xlu1 %25  }
  0x79   :  { %16 = vst.msk [vmem:[#allocation0] sm:$0x1] %vm15_vm2, %v14_v18  }
  0x7a   :  { %22 = vst.msk [vmem:[#allocation0] sm:$0x1] %vm21_vm3, %v20_v17  }
  0x7b   :  { %28 = vst.msk [vmem:[#allocation0] sm:$0x1] %vm27_vm4, %v26_v19  }
  0x7c   :  { %v32_v20 = vpop.permute.xlu0 %31   ;;  %v38_v21 = vpop.permute.xlu1 %37  }
  0x7d   :  { %34 = vst.msk [vmem:[#allocation0] sm:$0x1] %vm33_vm5, %v32_v20  }
  0x7e   :  { %40 = vst.msk [vmem:[#allocation0] sm:$0x1] %vm39_vm6, %v38_v21  }
  0x80   :  { %v44_v22 = vpop.permute.xlu0 %43   ;;  %v50_v23 = vpop.permute.xlu1 %49  }
  0x81   :  { %46 = vst.msk [vmem:[#allocation0] sm:$0x1] %vm45_vm7, %v44_v22  }
  0x82   :  { %52 = vst.msk [vmem:[#allocation0] sm:$0x1] %vm51_vm8, %v50_v23  }
  0x84   :  { %v56_v24 = vpop.permute.xlu0 %55   ;;  %v62_v25 = vpop.permute.xlu1 %61  }
  0x85   :  { %58 = vst.msk [vmem:[#allocation0] sm:$0x1] %vm57_vm9, %v56_v24  }
  0x86   :  { %64 = vst.msk [vmem:[#allocation0] sm:$0x1] %vm63_vm10, %v62_v25  }
  0x88   :  { %v68_v26 = vpop.permute.xlu0 %67   ;;  %v74_v27 = vpop.permute.xlu1 %73  }
  0x89   :  { %70 = vst.msk [vmem:[#allocation0] sm:$0x1] %vm69_vm11, %v68_v26  }
  0x8a   :  { %76 = vst.msk [vmem:[#allocation0] sm:$0x1] %vm75_vm12, %v74_v27  }
  0x8c   :  { %v80_v28 = vpop.permute.xlu0 %79   ;;  %v86_v29 = vpop.permute.xlu1 %85  }
  0x8d   :  { %82 = vst.msk [vmem:[#allocation0] sm:$0x1] %vm81_vm13, %v80_v28  }
  0x8e   :  { %88 = vst.msk [vmem:[#allocation0] sm:$0x1] %vm87_vm14, %v86_v29  }
  0x90   :  { %v92_v30 = vpop.permute.xlu0 %91  }
  0x91   :  { %94 = vst.msk [vmem:[#allocation0] sm:$0x1] %vm93_vm15, %v92_v30  }
  0x98   :  { %v99_v31 = vld [vmem:[#allocation0] sm:$0x1] }
  0x99   :  { %102 = vst [vmem:[%s210_s1] sm:$0x1] %v99_v31 }

// kernel: conv_block_dense.3
= control target key start
LH: loop header
LB: loop body
LE: loop exit
PB: predicated region body
PF: predicated region fallthrough
CT: control target
= control target key end

     0   :  { %s111_s0 = inlined_call_operand.vmem [shape: bf16[32,128], index: 0, kind: input, shape index: {}]   ;;  %s112_s1 = inlined_call_operand.vmem [shape: f32[1,128], index: 1, kind: input, shape index: {}]   ;;  %s113_s2 = inlined_call_operand.vmem [shape: f32[1,128], index: 2, kind: input, shape index: {}]   ;;  %s114_s3 = inlined_call_operand.vmem [shape: f32[32,128], index: 3, kind: output, shape index: {}]  }
   0x1   :  { %v59_v0 = vld [vmem:[%s111_s0] sm:$0xff]   ;;  %v66_v4 = vld [vmem:[%s111_s0 + $0x8] sm:$0xff]  }
   0x2   :  { %v56_v1 = vld [vmem:[%s112_s1] ss:$0 sm:$0xff]  ;;  %v60_v2 = vunpack.c.l.bf16 %v59_v0  ;;  %v61_v3 = vunpack.c.h.bf16 %v59_v0  ;;  %v64_v6 = vunpack.c.l.bf16 %v66_v4  ;;  %v65_v7 = vunpack.c.h.bf16 %v66_v4 }
   0x3   :  { %v57_v5 = vld [vmem:[%s113_s2] ss:$0 sm:$0xff] }
   0x4   :  { %v29_v8 = vmul.f32 %v60_v2, %v56_v1  ;;  %v30_v9 = vmul.f32 %v61_v3, %v56_v1  ;;  %v31_v10 = vmul.f32 %v64_v6, %v56_v1  ;;  %v32_v11 = vmul.f32 %v65_v7, %v56_v1 }
   0x6   :  { %v40_v12 = vadd.f32 %v57_v5, %v29_v8  ;;  %v41_v13 = vadd.f32 %v57_v5, %v30_v9  ;;  %v42_v14 = vadd.f32 %v57_v5, %v31_v10  ;;  %v43_v15 = vadd.f32 %v57_v5, %v32_v11 }
   0x8   :  { %v44_v16 = vmax.f32 %v40_v12, 0.0  ;;  %v45_v17 = vmax.f32 %v41_v13, 0.0  ;;  %v46_v18 = vmax.f32 %v42_v14, 0.0  ;;  %v47_v19 = vmax.f32 %v43_v15, 0.0 }
   0xa   :  { %48 = vst [vmem:[%s114_s3] sm:$0xff] %v44_v16  ;;  %49 = vst [vmem:[%s114_s3 + $0x8] sm:$0xff] %v45_v17 }
   0xb   :  { %50 = vst [vmem:[%s114_s3 + $0x10] sm:$0xff] %v46_v18  ;;  %51 = vst [vmem:[%s114_s3 + $0x18] sm:$0xff] %v47_v19 }

// kernel: conv_block_dense.2
= control target key start
LH: loop header
LB: loop body
LE: loop exit
PB: predicated region body
PF: predicated region fallthrough
CT: control target
= control target key end

     0   :  { %s813_s15 = smov 0   ;;  %s918_s0 = inlined_call_operand.vmem [shape: bf16[2,18,72], index: 0, kind: input, shape index: {}]   ;;  %s919_s1 = inlined_call_operand.vmem [shape: bf16[3,72,128], index: 1, kind: input, shape index: {}]   ;;  %s920_s2 = inlined_call_operand.vmem [shape: bf16[32,128], index: 2, kind: output, shape index: {0}]   ;;  %s921_s3 = inlined_call_operand.vmem [shape: f32[2,1,128], index: 3, kind: output, shape index: {1}]   ;;  %s922_s4 = inlined_call_operand.vmem [shape: f32[2,1,128], index: 4, kind: output, shape index: {2}]  }
   0x1 LB: > { %s819_s16 = sadd.s32 4294967295, %s784_s15   ;;  %p637_p0 = scmp.ge.s32.totalorder %s784_s15, 1  ;;  %s784_s15 = sphi %s813_s15, %s15_s15  }
   0x2   : > { %p167_p1 = scmp.lt.s32.totalorder %s784_s15, 3 }
   0x4   : > { %p168_p2 = pnand %p637_p0, %p167_p1 }
   0x5   : > { %p199_p3 = scmp.lt.s32.totalorder (!%p168_p2), %s819_s16, 1  ;;  %s639_s29 = sshll.u32 (!%p168_p2), %s819_s16, 1 }
   0x6   : > { %171 = sbr.rel (%p168_p2) target bundleno = 268 (0x10c), region = 28  ;;  %p205_p4 = scmp.lt.s32.totalorder (!%p168_p2), %s639_s29, 3 }
   0xb   : > { %v761_v0 = vld [vmem:[%s919_s1 + $0x44] ss:$0 sps:$4 sm:$0xff]   ;;  %vm291_vm0 = vcmask 1043456   ;;  %v786_v1 = vmov 0.0   ;;  %v762_v2 = vld [vmem:[%s919_s1 + $0x20] ss:$0 sps:$4 sm:$0xff]  }
   0xc   : > { %708 = vmatprep.subr.bf16.mxu0 %v786_v1  ;;  %722 = vmatprep.subr.bf16.mxu1 %v786_v1  ;;  %v293_v3 = vsel %vm291_vm0, %v761_v0, 0  ;;  %v366_v4 = vsel %vm291_vm0, %v762_v2, 0  ;;  %v763_v5 = vld [vmem:[%s919_s1 + $0x3c] sm:$0xff]   ;;  %vm787_vm1 = vmmov 0   ;;  %v765_v7 = vld [vmem:[%s919_s1 + $0x34] sm:$0xff]   ;;  %s850_s27 = scalar_select %p199_p3, %s819_s16, 1 }
   0xd   : > { %709 = vmatpush3.bf16.msra.mxu0 %v293_v3  ;;  %723 = vmatpush3.bf16.msra.mxu1 %v366_v4  ;;  %v764_v6 = vld [vmem:[%s919_s1 + $0x18] sm:$0xff]   ;;  %v766_v8 = vld [vmem:[%s919_s1 + $0x10] sm:$0xff]   ;;  %v768_v10 = vld [vmem:[%s919_s1 + $0x8] sm:$0xff]   ;;  %vm247_vm2 = vsmask.f32 7424  ;;  %vm287_vm3 = vcmask 588800  }
   0xe   : > { %710 = vmatprep.subr.bf16.mxu0 %v786_v1  ;;  %724 = vmatprep.subr.bf16.mxu1 %v786_v1  ;;  %s750_s30 = smul.u32 12, %s850_s27  ;;  %v767_v9 = vld [vmem:[%s919_s1 + $0x2c] sm:$0xff]   ;;  %v769_v13 = vld [vmem:[%s919_s1 + $0x24] sm:$0xff]   ;;  %v775_v25 = vld [vmem:[%s919_s1 + $0x58] sm:$0xff]   ;;  %vm419_vm4 = vcmask 1046528   ;;  %s924_s29 = smov (!%p205_p4, %s639_s29), 3 }
   0xf   : > { %718 = vmatprep.mubr.msk.bf16.mxu0 %vm787_vm1, %v786_v1  ;;  %732 = vmatprep.mubr.msk.bf16.mxu1 %vm787_vm1, %v786_v1  ;;  %v770_v17 = vld [vmem:[%s919_s1] sm:$0xff]   ;;  %v773_v18 = vld [vmem:[%s919_s1 + $0x68] ss:$0 sps:$4 sm:$0xff]   ;;  %v776_v26 = vld [vmem:[%s919_s1 + $0x50] sm:$0xff]   ;;  %s212_s9 = scalar_lea.vmem %s921_s3, %s850_s27  ;;  %s215_s12 = scalar_lea.vmem %s922_s4, %s850_s27 }
  0x10   : > { %s203_s11 = scalar_lea.vmem %s918_s0, %s750_s30  ;;  %v454_v22 = vsel %vm291_vm0, %v773_v18, 0  ;;  %v774_v24 = vld [vmem:[%s919_s1 + $0x60] sm:$0xff]   ;;  %v777_v27 = vld [vmem:[%s919_s1 + $0x48] sm:$0xff]   ;;  %s640_s30 = sshll.u32 %s924_s29, 2 }
  0x11   : > { %711 = vmatpush3.bf16.msra.mxu0 %v763_v5  ;;  %725 = vmatpush3.bf16.msra.mxu1 %v764_v6  ;;  %v771_v11 = vld [vmem:[%s203_s11] sm:$0xff]   ;;  %v772_v12 = vld [vmem:[%s203_s11 + $0x8] ss:$0 sps:$4 sm:$0x11]   ;;  %s208_s7 = scalar_lea.vmem %s920_s2, %s640_s30 }
  0x12   : > { %712 = vmatprep.subr.bf16.mxu0 %v786_v1  ;;  %726 = vmatprep.subr.bf16.mxu1 %v786_v1  ;;  %v249_v14 = vshrl.u32 %v771_v11, 16  ;;  %v251_v15 = vshll.u32 %v771_v11, 16  ;;  %v256_v16 = vshll.u32 %v772_v12, 16  ;;  %v420_v28 = vrot.slane %v771_v11, 1 }
  0x13   : > { %v421_v29 = vrot.slane %v772_v12, 1 }
  0x14   : > { %v253_v19 = vrot.slane %v251_v15, 1  ;;  %v258_v20 = vrot.slane %v256_v16, 1 }
  0x15   : > { %713 = vmatpush3.bf16.msra.mxu0 %v765_v7  ;;  %727 = vmatpush3.bf16.msra.mxu1 %v766_v8  ;;  %v422_v30 = vsel %vm419_vm4, %v420_v28, %v421_v29 }
  0x16   : > { %714 = vmatprep.subr.bf16.mxu0 %v786_v1  ;;  %728 = vmatprep.subr.bf16.mxu1 %v786_v1  ;;  %v254_v21 = vor.u32 %v253_v19, %v249_v14 }
  0x18   : > { %v259_v23 = vsel %vm247_vm2, %v254_v21, %v258_v20 }
  0x19   : > { %715 = vmatpush3.bf16.msra.mxu0 %v767_v9  ;;  %729 = vmatpush3.bf16.msra.mxu1 %v768_v10 }
  0x1a   : > { %716 = vmatprep.subr.bf16.mxu0 %v786_v1  ;;  %730 = vmatprep.subr.bf16.mxu1 %v786_v1 }
  0x1d   : > { %717 = vmatpush3.bf16.msra.mxu0 %v769_v13  ;;  %731 = vmatpush3.bf16.msra.mxu1 %v770_v17 }
  0x1e   : > { %736 = vmatprep.subr.bf16.mxu0 %v786_v1 }
  0x20   : > { %719 = vmatmul.mubr.msk.bf16.vlgmr.msra.gmra.mxu0 %vm287_vm3, %v259_v23  ;;  %733 = vmatmul.mubr.msk.bf16.vlgmr.msra.gmra.mxu1 %vm287_vm3, %v771_v11 }
  0x21   : > { %737 = vmatpush3.bf16.msra.mxu0 %v454_v22  ;;  %746 = vmatprep.mubr.msk.bf16.mxu0 %vm787_vm1, %v786_v1 }
  0x22   : > { %738 = vmatprep.subr.bf16.mxu0 %v786_v1 }
  0x25   : > { %739 = vmatpush3.bf16.msra.mxu0 %v774_v24 }
  0x26   : > { %740 = vmatprep.subr.bf16.mxu0 %v786_v1 }
  0x29   : > { %741 = vmatpush3.bf16.msra.mxu0 %v775_v25 }
  0x2a   : > { %742 = vmatprep.subr.bf16.mxu0 %v786_v1 }
  0x2d   : > { %743 = vmatpush3.bf16.msra.mxu0 %v776_v26 }
  0x2e   : > { %744 = vmatprep.subr.bf16.mxu0 %v786_v1 }
  0x31   : > { %745 = vmatpush3.bf16.msra.mxu0 %v777_v27 }
  0x34   : > { %747 = vmatmul.mubr.msk.bf16.vlgmr.msra.gmra.mxu0 %vm287_vm3, %v422_v30 }
  0xe0   : > { %v329_v31 = vpop.f32.mrf.mxu0  ;;  %v402_v32 = vpop.f32.mrf.mxu1 }
  0xe1   : > { %v403_v40 = vadd.f32 %v402_v32, %v329_v31 }
  0xe2   : > { %v720_v33 = vpop.f32.mrf.mxu0  ;;  %v734_v34 = vpop.f32.mrf.mxu1 }
  0xe4   : > { %v332_v35 = vpop.f32.mrf.mxu0  ;;  %v405_v36 = vpop.f32.mrf.mxu1 }
  0xe5   : > { %v406_v42 = vadd.f32 %v405_v36, %v332_v35 }
  0xe6   : > { %v721_v37 = vpop.f32.mrf.mxu0  ;;  %v735_v38 = vpop.f32.mrf.mxu1 }
  0xf4   : > { %v490_v39 = vpop.f32.mrf.mxu0 }
  0xf5   : > { %v497_v43 = vadd.f32 %v490_v39, %v403_v40 }
  0xf6   : > { %v748_v41 = vpop.f32.mrf.mxu0 }
  0xf7   : > { %v517_v47 = vmul.f32 %v497_v43, %v497_v43 }
  0xf8   : > { %v493_v44 = vpop.f32.mrf.mxu0 }
  0xf9   : > { %v498_v45 = vadd.f32 %v493_v44, %v406_v42 }
  0xfa   : > { %v749_v46 = vpop.f32.mrf.mxu0 }
  0xfb   : > { %v688_v48 = vpack.c.bf16 %v498_v45, %v497_v43  ;;  %v509_v49 = vadd.f32 %v498_v45, %v497_v43  ;;  %v518_v50 = vmul.f32 %v498_v45, %v498_v45 }
  0xfd   : > { %689 = vst [vmem:[%s208_s7] sm:$0xff] %v688_v48   ;;  %v510_v51 = vrot.slane %v509_v49, 4  ;;  %v519_v52 = vadd.f32 %v518_v50, %v517_v47 }
  0xff   : > { %v511_v53 = vadd.f32 %v510_v51, %v509_v49  ;;  %v520_v54 = vrot.slane %v519_v52, 4 }
 0x101   : > { %v512_v55 = vrot.slane %v511_v53, 2  ;;  %v521_v56 = vadd.f32 %v520_v54, %v519_v52 }
 0x103   : > { %v513_v57 = vadd.f32 %v512_v55, %v511_v53  ;;  %v522_v58 = vrot.slane %v521_v56, 2 }
 0x105   : > { %v514_v59 = vrot.slane %v513_v57, 1  ;;  %v523_v60 = vadd.f32 %v522_v58, %v521_v56 }
 0x107   : > { %v515_v61 = vadd.f32 %v514_v59, %v513_v57  ;;  %v524_v62 = vrot.slane %v523_v60, 1 }
 0x109   : > { %516 = vst [vmem:[%s212_s9] sm:$0x1] %v515_v61  ;;  %v525_v63 = vadd.f32 %v524_v62, %v523_v60 }
 0x10b   : > { %526 = vst [vmem:[%s215_s12] sm:$0x1] %v525_v63 }
 0x10c PF: > { %s15_s15 = sadd.s32 1, %s784_s15  }
 0x10d   : > { %p12_p5 = scmp.ge.s32.totalorder %s15_s15, 4  }
 0x10f   :  { %14 = sbr.rel (!%p12_p5) target bundleno = 1 (0x1), region = 84 }

</bundles_post_ra>
